<compile_context>
chip_gen: v5e
topology: v5e:2x2
jax: 0.10.0
libtpu: 0.0.40
codegen_flags: <defaults>
</compile_context>

<pallas_src>
import functools

import jax
import jax.numpy as jnp
from jax.experimental import pallas as pl
from jax.experimental.pallas import tpu as pltpu

LANES = 128
SUBLANES = 8
MAX_TILE_ROWS = 512          # (512,128) f32 = 256 KiB per input block; ~1 MiB double-buffered


def _edges(bins):
    e = [float(j) / float(bins) for j in range(bins + 1)]
    e[-1] = 1000.0
    return tuple(e)


def _pow(x, p):
    if p == 0.5:
        return jnp.sqrt(x)
    if p == 1.0:
        return x
    if p == 2.0:
        return x * x
    return jnp.power(x, p)


def _admae_kernel(pred_ref, tgt_ref, out_ref, hist_ref, w_ref,
                  *, bins, p, max_, tot, edges):
    """Fused two-phase kernel.  grid = (2, num_tiles).

    phase 0: per-bin histogram (lane-partial counts) accumulated in VMEM scratch.
    phase 1 (first tile): histogram -> per-bin weights (tot/count, /n) in VMEM scratch.
    phase 1: weighted sum accumulated into an (8, LANES) output slab.
    """
    phase = pl.program_id(0)
    tile = pl.program_id(1)

    @pl.when((phase == 0) & (tile == 0))
    def _init():
        hist_ref[...] = jnp.zeros_like(hist_ref)
        out_ref[...] = jnp.zeros_like(out_ref)

    x = pred_ref[...].astype(jnp.float32)
    t = tgt_ref[...].astype(jnp.float32)
    diff = jnp.abs(x - t)                       # loss = |pred - target|
    g = _pow(diff, p) * (1.0 / max_)            # g = |pred - target|**p / max_

    tile_rows = diff.shape[0]
    slabs = tile_rows // SUBLANES

    @pl.when(phase == 0)
    def _histogram():
        parts = []
        for b in range(bins):                   # exact reference binning (two-sided)
            m = ((g >= edges[b]) & (g < edges[b + 1])).astype(jnp.float32)
            parts.append(jnp.sum(m, axis=0, keepdims=True))     # (1, LANES) lane-partials
        hist_ref[...] += jnp.concatenate(parts, axis=0)          # (bins, LANES)

    @pl.when((phase == 1) & (tile == 0))
    def _weights():
        counts = jnp.sum(hist_ref[...], axis=1, keepdims=True)        # (bins, 1)
        has = counts > 0.0
        n = jnp.sum(has.astype(jnp.float32), axis=0, keepdims=True)   # (1, 1) non-empty bins
        w = jnp.where(has, tot / jnp.maximum(counts, 1.0), 0.0)
        w = w / jnp.maximum(n, 1.0)                                    # fold "weights /= n"
        w_ref[...] = jnp.broadcast_to(w, w_ref.shape)                  # (bins, LANES)

    @pl.when(phase == 1)
    def _weighted_sum():
        wtab = w_ref[...]                                # (bins, LANES), all lanes equal
        w_e = jnp.zeros_like(diff)
        for b in range(bins):                            # same two-sided bin test + select
            m = (g >= edges[b]) & (g < edges[b + 1])
            w_e = jnp.where(m, wtab[b:b + 1, :], w_e)
        res = (diff * w_e) * jnp.sqrt(diff)              # loss * weights * loss**0.5
        # Fold tile rows into an 8xLANES slab with plain vreg adds (no per-step XLU
        # collapse / masked sub-vreg stores); final collapse happens on the host.
        out_ref[...] += res.reshape(slabs, SUBLANES, LANES).sum(axis=0)


def ad_mae_pallas(pred, target, p=0.5, max_=1.0, bins=10):
    """Forward pass of AD_MAE, returns a scalar (mean of weighted loss)."""
    n_elems = int(pred.size)
    tot = float(pred.shape[0])                  # PyTorch: tot = pred.shape[0]
    edges = _edges(bins)

    # Keep native f32/bf16 (HBM-bandwidth friendly); upcast happens inside the kernel.
    dtype = pred.dtype if pred.dtype in (jnp.float32, jnp.bfloat16) else jnp.float32
    pf = pred.reshape(-1).astype(dtype)
    tf = target.reshape(-1).astype(dtype)

    # Sentinel padding: padded |pred - target| yields g >= 1000, i.e. outside every bin.
    sentinel = float(min((1000.0 * max_) ** (1.0 / p) * 2.0, 1e30))

    rows = -(-n_elems // LANES)
    rows = -(-rows // SUBLANES) * SUBLANES
    tile_rows = min(MAX_TILE_ROWS, rows)        # small inputs -> single tile, 2 grid steps
    num_tiles = -(-rows // tile_rows)
    rows = num_tiles * tile_rows
    padded = rows * LANES

    pf = jnp.pad(pf, (0, padded - n_elems), constant_values=sentinel)
    tf = jnp.pad(tf, (0, padded - n_elems), constant_values=0.0)
    pred2d = pf.reshape(rows, LANES)
    tgt2d = tf.reshape(rows, LANES)

    tile_spec = pl.BlockSpec((tile_rows, LANES), lambda ph, i: (i, 0))

    out = pl.pallas_call(
        functools.partial(_admae_kernel, bins=bins, p=p, max_=max_, tot=tot, edges=edges),
        out_shape=jax.ShapeDtypeStruct((SUBLANES, LANES), jnp.float32),
        grid=(2, num_tiles),                    # (phase, tile); phase 1 depends on phase 0
        in_specs=[tile_spec, tile_spec],
        out_specs=pl.BlockSpec((SUBLANES, LANES), lambda ph, i: (0, 0)),
        scratch_shapes=[
            pltpu.VMEM((bins, LANES), jnp.float32),   # histogram lane-partials
            pltpu.VMEM((bins, LANES), jnp.float32),   # per-bin weights (broadcast over lanes)
        ],
        compiler_params=pltpu.CompilerParams(
            # Both grid axes revisit the same output block / scratch -> keep sequential.
            dimension_semantics=("arbitrary", "arbitrary"),
        ),
    )(pred2d, tgt2d)

    # Kernel already folded the /n into the weights; finish with the global mean.
    return out.sum() / n_elems


# ---------------- pure-JAX reference (mirrors the PyTorch forward) ----------
def ad_mae_ref(pred, target, p=0.5, max_=1.0, bins=10):
    edges = _edges(bins)
    loss = jnp.abs(pred - target)
    g = loss ** p / max_
    tot = float(pred.shape[0])
    weights = jnp.zeros_like(g)
    n = jnp.asarray(0.0, jnp.float32)
    for i in range(bins):
        inds = (g >= edges[i]) & (g < edges[i + 1])
        num = jnp.sum(inds.astype(jnp.float32))
        has = num > 0
        n = n + has.astype(jnp.float32)
        weights = jnp.where(inds & has, tot / jnp.maximum(num, 1.0), weights)
    weights = jnp.where(n > 0, weights / jnp.maximum(n, 1.0), weights)
    res = loss * (weights * loss ** 0.5)
    return jnp.mean(res)


if __name__ == "__main__":
    key = jax.random.PRNGKey(0)
    k1, k2 = jax.random.split(key)
    # NCHW shapes as the PyTorch module would see them.
    pred = jax.random.normal(k1, (2, 4, 16, 16), dtype=jnp.float32)
    target = jax.random.normal(k2, (2, 4, 16, 16), dtype=jnp.float32)

    out = jax.block_until_ready(ad_mae_pallas(pred, target))
    ref = jax.block_until_ready(ad_mae_ref(pred, target))

    err = abs(float(out) - float(ref))
    assert err < 1e-4 * max(1.0, abs(float(ref))), (float(out), float(ref))

    print("KERNEL_OK")
</pallas_src>

<mosaic_0001>
module attributes {stable_mosaic.version = 11 : i64} {
  func.func @_admae_kernel(%arg0: i32, %arg1: i32, %arg2: memref<16x128xf32, #tpu.memory_space<vmem>>, %arg3: memref<16x128xf32, #tpu.memory_space<vmem>>, %arg4: memref<8x128xf32, #tpu.memory_space<vmem>>, %arg5: memref<10x128xf32, #tpu.memory_space<vmem>>, %arg6: memref<10x128xf32, #tpu.memory_space<vmem>>) attributes {dimension_semantics = [#tpu.dimension_semantics<arbitrary>, #tpu.dimension_semantics<arbitrary>], iteration_bounds = array<i64: 2, 1>, scalar_prefetch = 0 : i64, scratch_operands = 2 : i64, tpu.core_type = #tpu.core_type<tc>, window_params = [{transform_indices = @transform_0, window_bounds = array<i64: 16, 128>}, {transform_indices = @transform_1, window_bounds = array<i64: 16, 128>}, {pipeline_mode = #tpu.pipeline_mode<synchronous>, transform_indices = @transform_2, window_bounds = array<i64: 8, 128>}]} {
    %c0_i32 = arith.constant 0 : i32
    %0 = arith.cmpi eq, %arg0, %c0_i32 : i32
    %c0_i32_0 = arith.constant 0 : i32
    %1 = arith.cmpi eq, %arg1, %c0_i32_0 : i32
    %2 = arith.andi %0, %1 : i1
    %3 = arith.extui %2 : i1 to i32
    %c0_i32_1 = arith.constant 0 : i32
    %4 = arith.cmpi ne, %3, %c0_i32_1 : i32
    scf.if %4 {
      %cst_11 = arith.constant 0.000000e+00 : f32
      %23 = vector.broadcast %cst_11 : f32 to vector<10x128xf32>
      %c0_12 = arith.constant 0 : index
      %c0_13 = arith.constant 0 : index
      %24 = vector.load %arg5[%c0_12, %c0_13] : memref<10x128xf32, #tpu.memory_space<vmem>>, vector<10x128xf32>
      tpu.vector_store %arg5[%c0_12, %c0_13], %23 {strides = array<i32>} : memref<10x128xf32, #tpu.memory_space<vmem>>, vector<10x128xf32>,
      %cst_14 = arith.constant 0.000000e+00 : f32
      %25 = vector.broadcast %cst_14 : f32 to vector<8x128xf32>
      %c0_15 = arith.constant 0 : index
      %c0_16 = arith.constant 0 : index
      %26 = vector.load %arg4[%c0_15, %c0_16] : memref<8x128xf32, #tpu.memory_space<vmem>>, vector<8x128xf32>
      tpu.vector_store %arg4[%c0_15, %c0_16], %25 {strides = array<i32>} : memref<8x128xf32, #tpu.memory_space<vmem>>, vector<8x128xf32>,
    } else {
    }
    %c0 = arith.constant 0 : index
    %c0_2 = arith.constant 0 : index
    %5 = vector.load %arg2[%c0, %c0_2] : memref<16x128xf32, #tpu.memory_space<vmem>>, vector<16x128xf32>
    %c0_3 = arith.constant 0 : index
    %c0_4 = arith.constant 0 : index
    %6 = vector.load %arg3[%c0_3, %c0_4] : memref<16x128xf32, #tpu.memory_space<vmem>>, vector<16x128xf32>
    %7 = arith.subf %5, %6 : vector<16x128xf32>
    %8 = math.absf %7 : vector<16x128xf32>
    %9 = math.sqrt %8 : vector<16x128xf32>
    %cst = arith.constant 1.000000e+00 : f32
    %10 = vector.broadcast %cst : f32 to vector<16x128xf32>
    %11 = arith.mulf %9, %10 : vector<16x128xf32>
    %c0_i32_5 = arith.constant 0 : i32
    %12 = arith.cmpi eq, %arg0, %c0_i32_5 : i32
    %13 = arith.extui %12 : i1 to i32
    %c0_i32_6 = arith.constant 0 : i32
    %14 = arith.cmpi ne, %13, %c0_i32_6 : i32
    scf.if %14 {
      %cst_11 = arith.constant 0.000000e+00 : f32
      %23 = vector.broadcast %cst_11 : f32 to vector<16x128xf32>
      %24 = arith.cmpf oge, %11, %23 : vector<16x128xf32>
      %cst_12 = arith.constant 1.000000e-01 : f32
      %25 = vector.broadcast %cst_12 : f32 to vector<16x128xf32>
      %26 = arith.cmpf olt, %11, %25 : vector<16x128xf32>
      %27 = arith.andi %24, %26 : vector<16x128xi1>
      %28 = arith.extui %27 : vector<16x128xi1> to vector<16x128xi32>
      %29 = arith.sitofp %28 : vector<16x128xi32> to vector<16x128xf32>
      %cst_13 = arith.constant dense<0.000000e+00> : vector<128xf32>
      %30 = vector.multi_reduction <add>, %29, %cst_13 [0] : vector<16x128xf32> to vector<128xf32>
      %31 = vector.shape_cast %30 : vector<128xf32> to vector<1x128xf32>
      %cst_14 = arith.constant 1.000000e-01 : f32
      %32 = vector.broadcast %cst_14 : f32 to vector<16x128xf32>
      %33 = arith.cmpf oge, %11, %32 : vector<16x128xf32>
      %cst_15 = arith.constant 2.000000e-01 : f32
      %34 = vector.broadcast %cst_15 : f32 to vector<16x128xf32>
      %35 = arith.cmpf olt, %11, %34 : vector<16x128xf32>
      %36 = arith.andi %33, %35 : vector<16x128xi1>
      %37 = arith.extui %36 : vector<16x128xi1> to vector<16x128xi32>
      %38 = arith.sitofp %37 : vector<16x128xi32> to vector<16x128xf32>
      %cst_16 = arith.constant dense<0.000000e+00> : vector<128xf32>
      %39 = vector.multi_reduction <add>, %38, %cst_16 [0] : vector<16x128xf32> to vector<128xf32>
      %40 = vector.shape_cast %39 : vector<128xf32> to vector<1x128xf32>
      %cst_17 = arith.constant 2.000000e-01 : f32
      %41 = vector.broadcast %cst_17 : f32 to vector<16x128xf32>
      %42 = arith.cmpf oge, %11, %41 : vector<16x128xf32>
      %cst_18 = arith.constant 3.000000e-01 : f32
      %43 = vector.broadcast %cst_18 : f32 to vector<16x128xf32>
      %44 = arith.cmpf olt, %11, %43 : vector<16x128xf32>
      %45 = arith.andi %42, %44 : vector<16x128xi1>
      %46 = arith.extui %45 : vector<16x128xi1> to vector<16x128xi32>
      %47 = arith.sitofp %46 : vector<16x128xi32> to vector<16x128xf32>
      %cst_19 = arith.constant dense<0.000000e+00> : vector<128xf32>
      %48 = vector.multi_reduction <add>, %47, %cst_19 [0] : vector<16x128xf32> to vector<128xf32>
      %49 = vector.shape_cast %48 : vector<128xf32> to vector<1x128xf32>
      %cst_20 = arith.constant 3.000000e-01 : f32
      %50 = vector.broadcast %cst_20 : f32 to vector<16x128xf32>
      %51 = arith.cmpf oge, %11, %50 : vector<16x128xf32>
      %cst_21 = arith.constant 4.000000e-01 : f32
      %52 = vector.broadcast %cst_21 : f32 to vector<16x128xf32>
      %53 = arith.cmpf olt, %11, %52 : vector<16x128xf32>
      %54 = arith.andi %51, %53 : vector<16x128xi1>
      %55 = arith.extui %54 : vector<16x128xi1> to vector<16x128xi32>
      %56 = arith.sitofp %55 : vector<16x128xi32> to vector<16x128xf32>
      %cst_22 = arith.constant dense<0.000000e+00> : vector<128xf32>
      %57 = vector.multi_reduction <add>, %56, %cst_22 [0] : vector<16x128xf32> to vector<128xf32>
      %58 = vector.shape_cast %57 : vector<128xf32> to vector<1x128xf32>
      %cst_23 = arith.constant 4.000000e-01 : f32
      %59 = vector.broadcast %cst_23 : f32 to vector<16x128xf32>
      %60 = arith.cmpf oge, %11, %59 : vector<16x128xf32>
      %cst_24 = arith.constant 5.000000e-01 : f32
      %61 = vector.broadcast %cst_24 : f32 to vector<16x128xf32>
      %62 = arith.cmpf olt, %11, %61 : vector<16x128xf32>
      %63 = arith.andi %60, %62 : vector<16x128xi1>
      %64 = arith.extui %63 : vector<16x128xi1> to vector<16x128xi32>
      %65 = arith.sitofp %64 : vector<16x128xi32> to vector<16x128xf32>
      %cst_25 = arith.constant dense<0.000000e+00> : vector<128xf32>
      %66 = vector.multi_reduction <add>, %65, %cst_25 [0] : vector<16x128xf32> to vector<128xf32>
      %67 = vector.shape_cast %66 : vector<128xf32> to vector<1x128xf32>
      %cst_26 = arith.constant 5.000000e-01 : f32
      %68 = vector.broadcast %cst_26 : f32 to vector<16x128xf32>
      %69 = arith.cmpf oge, %11, %68 : vector<16x128xf32>
      %cst_27 = arith.constant 6.000000e-01 : f32
      %70 = vector.broadcast %cst_27 : f32 to vector<16x128xf32>
      %71 = arith.cmpf olt, %11, %70 : vector<16x128xf32>
      %72 = arith.andi %69, %71 : vector<16x128xi1>
      %73 = arith.extui %72 : vector<16x128xi1> to vector<16x128xi32>
      %74 = arith.sitofp %73 : vector<16x128xi32> to vector<16x128xf32>
      %cst_28 = arith.constant dense<0.000000e+00> : vector<128xf32>
      %75 = vector.multi_reduction <add>, %74, %cst_28 [0] : vector<16x128xf32> to vector<128xf32>
      %76 = vector.shape_cast %75 : vector<128xf32> to vector<1x128xf32>
      %cst_29 = arith.constant 6.000000e-01 : f32
      %77 = vector.broadcast %cst_29 : f32 to vector<16x128xf32>
      %78 = arith.cmpf oge, %11, %77 : vector<16x128xf32>
      %cst_30 = arith.constant 0.699999988 : f32
      %79 = vector.broadcast %cst_30 : f32 to vector<16x128xf32>
      %80 = arith.cmpf olt, %11, %79 : vector<16x128xf32>
      %81 = arith.andi %78, %80 : vector<16x128xi1>
      %82 = arith.extui %81 : vector<16x128xi1> to vector<16x128xi32>
      %83 = arith.sitofp %82 : vector<16x128xi32> to vector<16x128xf32>
      %cst_31 = arith.constant dense<0.000000e+00> : vector<128xf32>
      %84 = vector.multi_reduction <add>, %83, %cst_31 [0] : vector<16x128xf32> to vector<128xf32>
      %85 = vector.shape_cast %84 : vector<128xf32> to vector<1x128xf32>
      %cst_32 = arith.constant 0.699999988 : f32
      %86 = vector.broadcast %cst_32 : f32 to vector<16x128xf32>
      %87 = arith.cmpf oge, %11, %86 : vector<16x128xf32>
      %cst_33 = arith.constant 8.000000e-01 : f32
      %88 = vector.broadcast %cst_33 : f32 to vector<16x128xf32>
      %89 = arith.cmpf olt, %11, %88 : vector<16x128xf32>
      %90 = arith.andi %87, %89 : vector<16x128xi1>
      %91 = arith.extui %90 : vector<16x128xi1> to vector<16x128xi32>
      %92 = arith.sitofp %91 : vector<16x128xi32> to vector<16x128xf32>
      %cst_34 = arith.constant dense<0.000000e+00> : vector<128xf32>
      %93 = vector.multi_reduction <add>, %92, %cst_34 [0] : vector<16x128xf32> to vector<128xf32>
      %94 = vector.shape_cast %93 : vector<128xf32> to vector<1x128xf32>
      %cst_35 = arith.constant 8.000000e-01 : f32
      %95 = vector.broadcast %cst_35 : f32 to vector<16x128xf32>
      %96 = arith.cmpf oge, %11, %95 : vector<16x128xf32>
      %cst_36 = arith.constant 0.899999976 : f32
      %97 = vector.broadcast %cst_36 : f32 to vector<16x128xf32>
      %98 = arith.cmpf olt, %11, %97 : vector<16x128xf32>
      %99 = arith.andi %96, %98 : vector<16x128xi1>
      %100 = arith.extui %99 : vector<16x128xi1> to vector<16x128xi32>
      %101 = arith.sitofp %100 : vector<16x128xi32> to vector<16x128xf32>
      %cst_37 = arith.constant dense<0.000000e+00> : vector<128xf32>
      %102 = vector.multi_reduction <add>, %101, %cst_37 [0] : vector<16x128xf32> to vector<128xf32>
      %103 = vector.shape_cast %102 : vector<128xf32> to vector<1x128xf32>
      %cst_38 = arith.constant 0.899999976 : f32
      %104 = vector.broadcast %cst_38 : f32 to vector<16x128xf32>
      %105 = arith.cmpf oge, %11, %104 : vector<16x128xf32>
      %cst_39 = arith.constant 1.000000e+03 : f32
      %106 = vector.broadcast %cst_39 : f32 to vector<16x128xf32>
      %107 = arith.cmpf olt, %11, %106 : vector<16x128xf32>
      %108 = arith.andi %105, %107 : vector<16x128xi1>
      %109 = arith.extui %108 : vector<16x128xi1> to vector<16x128xi32>
      %110 = arith.sitofp %109 : vector<16x128xi32> to vector<16x128xf32>
      %cst_40 = arith.constant dense<0.000000e+00> : vector<128xf32>
      %111 = vector.multi_reduction <add>, %110, %cst_40 [0] : vector<16x128xf32> to vector<128xf32>
      %112 = vector.shape_cast %111 : vector<128xf32> to vector<1x128xf32>
      %c0_41 = arith.constant 0 : index
      %c0_42 = arith.constant 0 : index
      %113 = vector.load %arg5[%c0_41, %c0_42] : memref<10x128xf32, #tpu.memory_space<vmem>>, vector<10x128xf32>
      %114 = tpu.concatenate %31, %40, %49, %58, %67, %76, %85, %94, %103, %112 in 0 : vector<1x128xf32>, vector<1x128xf32>, vector<1x128xf32>, vector<1x128xf32>, vector<1x128xf32>, vector<1x128xf32>, vector<1x128xf32>, vector<1x128xf32>, vector<1x128xf32>, vector<1x128xf32> -> vector<10x128xf32>
      %115 = arith.addf %113, %114 : vector<10x128xf32>
      %c0_43 = arith.constant 0 : index
      %c0_44 = arith.constant 0 : index
      %116 = vector.load %arg5[%c0_43, %c0_44] : memref<10x128xf32, #tpu.memory_space<vmem>>, vector<10x128xf32>
      tpu.vector_store %arg5[%c0_43, %c0_44], %115 {strides = array<i32>} : memref<10x128xf32, #tpu.memory_space<vmem>>, vector<10x128xf32>,
    } else {
    }
    %c1_i32 = arith.constant 1 : i32
    %15 = arith.cmpi eq, %arg0, %c1_i32 : i32
    %c0_i32_7 = arith.constant 0 : i32
    %16 = arith.cmpi eq, %arg1, %c0_i32_7 : i32
    %17 = arith.andi %15, %16 : i1
    %18 = arith.extui %17 : i1 to i32
    %c0_i32_8 = arith.constant 0 : i32
    %19 = arith.cmpi ne, %18, %c0_i32_8 : i32
    scf.if %19 {
      %c0_11 = arith.constant 0 : index
      %c0_12 = arith.constant 0 : index
      %23 = vector.load %arg5[%c0_11, %c0_12] : memref<10x128xf32, #tpu.memory_space<vmem>>, vector<10x128xf32>
      %cst_13 = arith.constant dense<0.000000e+00> : vector<10xf32>
      %24 = vector.multi_reduction <add>, %23, %cst_13 [1] : vector<10x128xf32> to vector<10xf32>
      %25 = vector.shape_cast %24 : vector<10xf32> to vector<10x1xf32>
      %cst_14 = arith.constant 0.000000e+00 : f32
      %26 = vector.broadcast %cst_14 : f32 to vector<10x1xf32>
      %27 = arith.cmpf ogt, %25, %26 : vector<10x1xf32>
      %28 = arith.extui %27 : vector<10x1xi1> to vector<10x1xi32>
      %29 = arith.sitofp %28 : vector<10x1xi32> to vector<10x1xf32>
      %cst_15 = arith.constant dense<0.000000e+00> : vector<1xf32>
      %30 = vector.multi_reduction <add>, %29, %cst_15 [0] : vector<10x1xf32> to vector<1xf32>
      %31 = vector.shape_cast %30 : vector<1xf32> to vector<1x1xf32>
      %cst_16 = arith.constant 1.000000e+00 : f32
      %32 = vector.broadcast %cst_16 : f32 to vector<10x1xf32>
      %33 = arith.maximumf %25, %32 : vector<10x1xf32>
      %cst_17 = arith.constant 2.000000e+00 : f32
      %34 = vector.broadcast %cst_17 : f32 to vector<10x1xf32>
      %35 = arith.divf %34, %33 : vector<10x1xf32>
      %cst_18 = arith.constant 0.000000e+00 : f32
      %36 = vector.broadcast %cst_18 : f32 to vector<10x1xf32>
      %37 = arith.select %27, %35, %36 : vector<10x1xi1>, vector<10x1xf32>
      %cst_19 = arith.constant 1.000000e+00 : f32
      %38 = vector.broadcast %cst_19 : f32 to vector<1x1xf32>
      %39 = arith.maximumf %31, %38 : vector<1x1xf32>
      %40 = vector.broadcast %39 : vector<1x1xf32> to vector<10x1xf32>
      %41 = arith.divf %37, %40 : vector<10x1xf32>
      %42 = vector.shape_cast %41 : vector<10x1xf32> to vector<10x1xf32>
      %43 = vector.broadcast %42 : vector<10x1xf32> to vector<10x128xf32>
      %c0_20 = arith.constant 0 : index
      %c0_21 = arith.constant 0 : index
      %44 = vector.load %arg6[%c0_20, %c0_21] : memref<10x128xf32, #tpu.memory_space<vmem>>, vector<10x128xf32>
      tpu.vector_store %arg6[%c0_20, %c0_21], %43 {strides = array<i32>} : memref<10x128xf32, #tpu.memory_space<vmem>>, vector<10x128xf32>,
    } else {
    }
    %c1_i32_9 = arith.constant 1 : i32
    %20 = arith.cmpi eq, %arg0, %c1_i32_9 : i32
    %21 = arith.extui %20 : i1 to i32
    %c0_i32_10 = arith.constant 0 : i32
    %22 = arith.cmpi ne, %21, %c0_i32_10 : i32
    scf.if %22 {
      %c0_11 = arith.constant 0 : index
      %c0_12 = arith.constant 0 : index
      %23 = vector.load %arg6[%c0_11, %c0_12] : memref<10x128xf32, #tpu.memory_space<vmem>>, vector<10x128xf32>
      %cst_13 = arith.constant 0.000000e+00 : f32
      %24 = vector.broadcast %cst_13 : f32 to vector<16x128xf32>
      %cst_14 = arith.constant 0.000000e+00 : f32
      %25 = vector.broadcast %cst_14 : f32 to vector<16x128xf32>
      %26 = arith.cmpf oge, %11, %25 : vector<16x128xf32>
      %cst_15 = arith.constant 1.000000e-01 : f32
      %27 = vector.broadcast %cst_15 : f32 to vector<16x128xf32>
      %28 = arith.cmpf olt, %11, %27 : vector<16x128xf32>
      %29 = arith.andi %26, %28 : vector<16x128xi1>
      %30 = vector.extract_strided_slice %23 {offsets = [0, 0], sizes = [1, 128], strides = [1, 1]} : vector<10x128xf32> to vector<1x128xf32>
      %31 = vector.shape_cast %30 : vector<1x128xf32> to vector<1x128xf32>
      %32 = vector.broadcast %31 : vector<1x128xf32> to vector<16x128xf32>
      %33 = arith.select %29, %32, %24 : vector<16x128xi1>, vector<16x128xf32>
      %cst_16 = arith.constant 1.000000e-01 : f32
      %34 = vector.broadcast %cst_16 : f32 to vector<16x128xf32>
      %35 = arith.cmpf oge, %11, %34 : vector<16x128xf32>
      %cst_17 = arith.constant 2.000000e-01 : f32
      %36 = vector.broadcast %cst_17 : f32 to vector<16x128xf32>
      %37 = arith.cmpf olt, %11, %36 : vector<16x128xf32>
      %38 = arith.andi %35, %37 : vector<16x128xi1>
      %39 = vector.extract_strided_slice %23 {offsets = [1, 0], sizes = [1, 128], strides = [1, 1]} : vector<10x128xf32> to vector<1x128xf32>
      %40 = vector.shape_cast %39 : vector<1x128xf32> to vector<1x128xf32>
      %41 = vector.broadcast %40 : vector<1x128xf32> to vector<16x128xf32>
      %42 = arith.select %38, %41, %33 : vector<16x128xi1>, vector<16x128xf32>
      %cst_18 = arith.constant 2.000000e-01 : f32
      %43 = vector.broadcast %cst_18 : f32 to vector<16x128xf32>
      %44 = arith.cmpf oge, %11, %43 : vector<16x128xf32>
      %cst_19 = arith.constant 3.000000e-01 : f32
      %45 = vector.broadcast %cst_19 : f32 to vector<16x128xf32>
      %46 = arith.cmpf olt, %11, %45 : vector<16x128xf32>
      %47 = arith.andi %44, %46 : vector<16x128xi1>
      %48 = vector.extract_strided_slice %23 {offsets = [2, 0], sizes = [1, 128], strides = [1, 1]} : vector<10x128xf32> to vector<1x128xf32>
      %49 = vector.shape_cast %48 : vector<1x128xf32> to vector<1x128xf32>
      %50 = vector.broadcast %49 : vector<1x128xf32> to vector<16x128xf32>
      %51 = arith.select %47, %50, %42 : vector<16x128xi1>, vector<16x128xf32>
      %cst_20 = arith.constant 3.000000e-01 : f32
      %52 = vector.broadcast %cst_20 : f32 to vector<16x128xf32>
      %53 = arith.cmpf oge, %11, %52 : vector<16x128xf32>
      %cst_21 = arith.constant 4.000000e-01 : f32
      %54 = vector.broadcast %cst_21 : f32 to vector<16x128xf32>
      %55 = arith.cmpf olt, %11, %54 : vector<16x128xf32>
      %56 = arith.andi %53, %55 : vector<16x128xi1>
      %57 = vector.extract_strided_slice %23 {offsets = [3, 0], sizes = [1, 128], strides = [1, 1]} : vector<10x128xf32> to vector<1x128xf32>
      %58 = vector.shape_cast %57 : vector<1x128xf32> to vector<1x128xf32>
      %59 = vector.broadcast %58 : vector<1x128xf32> to vector<16x128xf32>
      %60 = arith.select %56, %59, %51 : vector<16x128xi1>, vector<16x128xf32>
      %cst_22 = arith.constant 4.000000e-01 : f32
      %61 = vector.broadcast %cst_22 : f32 to vector<16x128xf32>
      %62 = arith.cmpf oge, %11, %61 : vector<16x128xf32>
      %cst_23 = arith.constant 5.000000e-01 : f32
      %63 = vector.broadcast %cst_23 : f32 to vector<16x128xf32>
      %64 = arith.cmpf olt, %11, %63 : vector<16x128xf32>
      %65 = arith.andi %62, %64 : vector<16x128xi1>
      %66 = vector.extract_strided_slice %23 {offsets = [4, 0], sizes = [1, 128], strides = [1, 1]} : vector<10x128xf32> to vector<1x128xf32>
      %67 = vector.shape_cast %66 : vector<1x128xf32> to vector<1x128xf32>
      %68 = vector.broadcast %67 : vector<1x128xf32> to vector<16x128xf32>
      %69 = arith.select %65, %68, %60 : vector<16x128xi1>, vector<16x128xf32>
      %cst_24 = arith.constant 5.000000e-01 : f32
      %70 = vector.broadcast %cst_24 : f32 to vector<16x128xf32>
      %71 = arith.cmpf oge, %11, %70 : vector<16x128xf32>
      %cst_25 = arith.constant 6.000000e-01 : f32
      %72 = vector.broadcast %cst_25 : f32 to vector<16x128xf32>
      %73 = arith.cmpf olt, %11, %72 : vector<16x128xf32>
      %74 = arith.andi %71, %73 : vector<16x128xi1>
      %75 = vector.extract_strided_slice %23 {offsets = [5, 0], sizes = [1, 128], strides = [1, 1]} : vector<10x128xf32> to vector<1x128xf32>
      %76 = vector.shape_cast %75 : vector<1x128xf32> to vector<1x128xf32>
      %77 = vector.broadcast %76 : vector<1x128xf32> to vector<16x128xf32>
      %78 = arith.select %74, %77, %69 : vector<16x128xi1>, vector<16x128xf32>
      %cst_26 = arith.constant 6.000000e-01 : f32
      %79 = vector.broadcast %cst_26 : f32 to vector<16x128xf32>
      %80 = arith.cmpf oge, %11, %79 : vector<16x128xf32>
      %cst_27 = arith.constant 0.699999988 : f32
      %81 = vector.broadcast %cst_27 : f32 to vector<16x128xf32>
      %82 = arith.cmpf olt, %11, %81 : vector<16x128xf32>
      %83 = arith.andi %80, %82 : vector<16x128xi1>
      %84 = vector.extract_strided_slice %23 {offsets = [6, 0], sizes = [1, 128], strides = [1, 1]} : vector<10x128xf32> to vector<1x128xf32>
      %85 = vector.shape_cast %84 : vector<1x128xf32> to vector<1x128xf32>
      %86 = vector.broadcast %85 : vector<1x128xf32> to vector<16x128xf32>
      %87 = arith.select %83, %86, %78 : vector<16x128xi1>, vector<16x128xf32>
      %cst_28 = arith.constant 0.699999988 : f32
      %88 = vector.broadcast %cst_28 : f32 to vector<16x128xf32>
      %89 = arith.cmpf oge, %11, %88 : vector<16x128xf32>
      %cst_29 = arith.constant 8.000000e-01 : f32
      %90 = vector.broadcast %cst_29 : f32 to vector<16x128xf32>
      %91 = arith.cmpf olt, %11, %90 : vector<16x128xf32>
      %92 = arith.andi %89, %91 : vector<16x128xi1>
      %93 = vector.extract_strided_slice %23 {offsets = [7, 0], sizes = [1, 128], strides = [1, 1]} : vector<10x128xf32> to vector<1x128xf32>
      %94 = vector.shape_cast %93 : vector<1x128xf32> to vector<1x128xf32>
      %95 = vector.broadcast %94 : vector<1x128xf32> to vector<16x128xf32>
      %96 = arith.select %92, %95, %87 : vector<16x128xi1>, vector<16x128xf32>
      %cst_30 = arith.constant 8.000000e-01 : f32
      %97 = vector.broadcast %cst_30 : f32 to vector<16x128xf32>
      %98 = arith.cmpf oge, %11, %97 : vector<16x128xf32>
      %cst_31 = arith.constant 0.899999976 : f32
      %99 = vector.broadcast %cst_31 : f32 to vector<16x128xf32>
      %100 = arith.cmpf olt, %11, %99 : vector<16x128xf32>
      %101 = arith.andi %98, %100 : vector<16x128xi1>
      %102 = vector.extract_strided_slice %23 {offsets = [8, 0], sizes = [1, 128], strides = [1, 1]} : vector<10x128xf32> to vector<1x128xf32>
      %103 = vector.shape_cast %102 : vector<1x128xf32> to vector<1x128xf32>
      %104 = vector.broadcast %103 : vector<1x128xf32> to vector<16x128xf32>
      %105 = arith.select %101, %104, %96 : vector<16x128xi1>, vector<16x128xf32>
      %cst_32 = arith.constant 0.899999976 : f32
      %106 = vector.broadcast %cst_32 : f32 to vector<16x128xf32>
      %107 = arith.cmpf oge, %11, %106 : vector<16x128xf32>
      %cst_33 = arith.constant 1.000000e+03 : f32
      %108 = vector.broadcast %cst_33 : f32 to vector<16x128xf32>
      %109 = arith.cmpf olt, %11, %108 : vector<16x128xf32>
      %110 = arith.andi %107, %109 : vector<16x128xi1>
      %111 = vector.extract_strided_slice %23 {offsets = [9, 0], sizes = [1, 128], strides = [1, 1]} : vector<10x128xf32> to vector<1x128xf32>
      %112 = vector.shape_cast %111 : vector<1x128xf32> to vector<1x128xf32>
      %113 = vector.broadcast %112 : vector<1x128xf32> to vector<16x128xf32>
      %114 = arith.select %110, %113, %105 : vector<16x128xi1>, vector<16x128xf32>
      %115 = arith.mulf %8, %114 : vector<16x128xf32>
      %116 = math.sqrt %8 : vector<16x128xf32>
      %117 = arith.mulf %115, %116 : vector<16x128xf32>
      %c0_34 = arith.constant 0 : index
      %c0_35 = arith.constant 0 : index
      %118 = vector.load %arg4[%c0_34, %c0_35] : memref<8x128xf32, #tpu.memory_space<vmem>>, vector<8x128xf32>
      %119 = vector.shape_cast %117 : vector<16x128xf32> to vector<2x8x128xf32>
      %cst_36 = arith.constant dense<0.000000e+00> : vector<8x128xf32>
      %120 = vector.multi_reduction <add>, %119, %cst_36 [0] : vector<2x8x128xf32> to vector<8x128xf32>
      %121 = arith.addf %118, %120 : vector<8x128xf32>
      %c0_37 = arith.constant 0 : index
      %c0_38 = arith.constant 0 : index
      %122 = vector.load %arg4[%c0_37, %c0_38] : memref<8x128xf32, #tpu.memory_space<vmem>>, vector<8x128xf32>
      tpu.vector_store %arg4[%c0_37, %c0_38], %121 {strides = array<i32>} : memref<8x128xf32, #tpu.memory_space<vmem>>, vector<8x128xf32>,
    } else {
    }
    return
  }
  func.func @transform_0(%arg0: i32, %arg1: i32) -> (i32, i32) {
    %c0_i32 = arith.constant 0 : i32
    %c0_i32_0 = arith.constant 0 : i32
    return %arg1, %c0_i32 : i32, i32
  }
  func.func @transform_1(%arg0: i32, %arg1: i32) -> (i32, i32) {
    %c0_i32 = arith.constant 0 : i32
    %c0_i32_0 = arith.constant 0 : i32
    return %arg1, %c0_i32 : i32, i32
  }
  func.func @transform_2(%arg0: i32, %arg1: i32) -> (i32, i32) {
    %c0_i32 = arith.constant 0 : i32
    %c0_i32_0 = arith.constant 0 : i32
    %c0_i32_1 = arith.constant 0 : i32
    return %c0_i32, %c0_i32_0 : i32, i32
  }
}

</mosaic_0001>

<bundles_post_ra>
// kernel: tpu_custom_call.1
= control target key start
LH: loop header
LB: loop body
LE: loop exit
PB: predicated region body
PF: predicated region fallthrough
CT: control target
= control target key end

     0   :  { %7 = vsyncpa [#allocation5], 0  ;;  %s1153_s0 = inlined_call_operand.hbm [shape: f32[16,128], index: 0, kind: input, shape index: {}]   ;;  %s1154_s1 = inlined_call_operand.hbm [shape: f32[16,128], index: 1, kind: input, shape index: {}]   ;;  %s1155_s2 = inlined_call_operand.hbm [shape: f32[8,128], index: 2, kind: output, shape index: {}]  }
   0x1   :  { %8 = vsyncpa [#allocation8], 0 }
   0x2   :  { %9 = vsyncpa [#allocation6], 0  ;;  %s916_s9 = smov 0   ;;  %s918_s10 = smov 0  }
   0x3   :  { %s920_s11 = smov 0  }
   0x4 LB: > { %s663_s12 = sadd.s32 4294967295, %s891_s11   ;;  %s27_s13 = sadd.s32 1, %s887_s10  ;;  %s891_s11 = sphi %s920_s11, %s15_s11   ;;  %s887_s10 = sphi %s918_s10, %s1159_s10   ;;  %s883_s9 = sphi %s916_s9, %s1158_s9  }
   0x5   : > { %p29_p0 = scmp.ge.s32.totalorder %s27_s13, 2  ;;  %p664_p1 = scmp.ge.s32.totalorder %s891_s11, 1 }
   0x6   : > { %p105_p2 = scmp.lt.s32.totalorder %s891_s11, 3  ;;  %p943_p4 = scmp.eq.s32.totalorder %s663_s12, 0 }
   0x7   : > { %s1161_s13 = smov (%p29_p0, %s27_s13), 0  ;;  %s119_s18 = sshll.u32 %s1153_s0, 4  ;;  %s120_s18 = int_to_ptr.hbm [resolvable:$true] %s119_s18 }
   0x8   : > { %p937_p3 = pnand %p664_p1, %p105_p2  ;;  %s893_s19 = smov [#allocation4]  }
   0x9   : > { %s121_s20 = sshll.u32 %s893_s19, 4  ;;  %s136_s23 = sshll.u32 %s1154_s1, 4  ;;  %s122_s20 = int_to_ptr.vmem [resolvable:$true] %s121_s20  ;;  %s137_s23 = int_to_ptr.hbm [resolvable:$true] %s136_s23 }
   0xa   : > { %p714_p5 = pneg %p937_p3  ;;  %s894_s24 = smov 128  }
   0xb   : > { %s895_s25 = smov 8   ;;  %s896_s26 = smov [#allocation7]  }
   0xc   : > { %p715_p6 = pnand %p943_p4, %p714_p5  ;;  %s138_s27 = sshll.u32 %s896_s26, 4  ;;  %s139_s27 = int_to_ptr.vmem [resolvable:$true] %s138_s27 }
   0xd   : > { %154 = sbr.rel (%p937_p3) target bundleno = 317 (0x13d), region = 28 }
   0xe   : > { %717 = dma.hbm_to_vmem [thread:$0]  (!%p715_p6), %s120_s18, 256, %s122_s20, [#allocation5], %s894_s24, %s894_s24, %s895_s25  }
   0xf   : > { %720 = dma.hbm_to_vmem [thread:$0]  (!%p715_p6), %s137_s23, 256, %s139_s27, [#allocation8], %s894_s24, %s894_s24, %s895_s25  }
  0x12   : > { %870 = dma.done.wait (%p943_p4), [#allocation5], 256  }
  0x13   : > { %872 = vsyncadd (%p943_p4), [#allocation5], 4294967040 }
  0x14   : > { %874 = dma.done.wait (%p943_p4), [#allocation8], 256  }
  0x15   : > { %876 = vsyncadd (%p943_p4), [#allocation8], 4294967040  ;;  %p174_p7 = scmp.eq.s32.totalorder %s883_s9, 0 }
  0x16   : > { %v897_v0 = vmov (%p174_p7), 0.0  }
  0x17   : > { %179 = sbr.rel (!%p174_p7) target bundleno = 28 (0x1c), region = 40  ;;  %180 = vst [vmem:[#allocation2] sm:$0xff] (%p174_p7), %v897_v0 }
  0x18   : > { %181 = vst [vmem:[#allocation2 + $0x8] sm:$0x3] (%p174_p7), %v897_v0 }
  0x19   : > { %182 = vst [vmem:[#allocation9] sm:$0xff] (%p174_p7), %v897_v0 }
  0x1c PF: > { %v183_v1 = vld [vmem:[#allocation4] sm:$0xff]  ;;  %v184_v2 = vld [vmem:[#allocation4 + $0x8] sm:$0xff]  ;;  %v185_v3 = vld [vmem:[#allocation7] sm:$0xff]  ;;  %p671_p8 = scmp.ne.s32.totalorder %s883_s9, 0 }
  0x1d   : > { %v186_v4 = vld [vmem:[#allocation7 + $0x8] sm:$0xff]  ;;  %v187_v5 = vsub.f32 %v183_v1, %v185_v3 }
  0x1e   : > { %v188_v6 = vsub.f32 %v184_v2, %v186_v4 }
  0x1f   : > { %v968_v7 = vand.u32 2147483647, %v187_v5 }
  0x20   : > { %v970_v8 = vand.u32 2147483647, %v188_v6 }
  0x21   : > { %759 = vrsqrt.f32 %v968_v7  ;;  %vm198_vm0 = vcmp.eq.f32.partialorder %v968_v7, inf  ;;  %v201_v20 = vand.u32 2147483648, %v968_v7  ;;  %vm200_vm1 = vcmp.eq.f32.partialorder %v968_v7, 0.0 }
  0x22   : > { %761 = vrsqrt.f32 %v970_v8  ;;  %vm210_vm2 = vcmp.eq.f32.partialorder %v970_v8, inf  ;;  %v213_v23 = vand.u32 2147483648, %v970_v8  ;;  %vm212_vm3 = vcmp.eq.f32.partialorder %v970_v8, 0.0 }
  0x27   : > { %v760_v9 = vpop.eup %759 }
  0x28   : > { %v762_v10 = vpop.eup %761  ;;  %v192_v11 = vmul.f32 %v760_v9, %v968_v7 }
  0x29   : > { %v204_v12 = vmul.f32 %v762_v10, %v970_v8 }
  0x2a   : > { %v193_v13 = vmul.f32 %v760_v9, %v192_v11 }
  0x2b   : > { %v205_v14 = vmul.f32 %v762_v10, %v204_v12 }
  0x2c   : > { %v194_v15 = vmul.f32 0.5, %v193_v13 }
  0x2d   : > { %v206_v16 = vmul.f32 0.5, %v205_v14 }
  0x2e   : > { %v195_v17 = vsub.f32 1.5, %v194_v15 }
  0x2f   : > { %v207_v18 = vsub.f32 1.5, %v206_v16 }
  0x30   : > { %v196_v19 = vmul.f32 %v760_v9, %v195_v17 }
  0x31   : > { %v208_v21 = vmul.f32 %v762_v10, %v207_v18 }
  0x32   : > { %v197_v22 = vmul.f32 %v196_v19, %v968_v7  ;;  %217 = sbr.rel (%p671_p8) target bundleno = 102 (0x66), region = 44 }
  0x33   : > { %v209_v24 = vmul.f32 %v208_v21, %v970_v8 }
  0x34   : > { %v199_v25 = vsel %vm198_vm0, %v968_v7, %v197_v22 }
  0x35   : > { %v985_v26 = vsel %vm200_vm1, %v201_v20, %v199_v25  ;;  %v211_v27 = vsel %vm210_vm2, %v970_v8, %v209_v24 }
  0x36   : > { %v988_v28 = vsel %vm212_vm3, %v213_v23, %v211_v27 }
  0x37   : > { %vm218_vm4 = vcmp.ge.f32.partialorder %v985_v26, 0.0  ;;  %vm219_vm5 = vcmp.ge.f32.partialorder %v988_v28, 0.0  ;;  %vm220_vm6 = vcmp.lt.f32.partialorder %v985_v26, 0.1  ;;  %vm221_vm7 = vcmp.lt.f32.partialorder %v988_v28, 0.1 }
  0x38   : > { %vm222_vm8 = vmand %vm218_vm4, %vm220_vm6  ;;  %vm235_vm9 = vcmp.ge.f32.partialorder %v985_v26, 0.1  ;;  %vm236_vm10 = vcmp.ge.f32.partialorder %v988_v28, 0.1  ;;  %v898_v29 = vmov 0.0   ;;  %vm288_vm1 = vcmp.lt.f32.partialorder %v985_v26, 0.5 }
  0x39   : > { %vm223_vm11 = vmand %vm219_vm5, %vm221_vm7  ;;  %v672_v30 = vsel %vm222_vm8, 1.0, %v898_v29  ;;  %vm237_vm12 = vcmp.lt.f32.partialorder %v985_v26, 0.2  ;;  %vm238_vm13 = vcmp.lt.f32.partialorder %v988_v28, 0.2  ;;  %vm289_vm8 = vcmp.lt.f32.partialorder %v988_v28, 0.5 }
  0x3a   : > { %v673_v31 = vsel %vm223_vm11, 1.0, %v898_v29  ;;  %vm239_vm14 = vmand %vm235_vm9, %vm237_vm12  ;;  %vm252_vm15 = vcmp.ge.f32.partialorder %v985_v26, 0.2  ;;  %vm253_vm0 = vcmp.ge.f32.partialorder %v988_v28, 0.2 }
  0x3b   : > { %v228_v32 = vadd.f32 %v673_v31, %v672_v30  ;;  %vm240_vm2 = vmand %vm236_vm10, %vm238_vm13  ;;  %v674_v33 = vsel %vm239_vm14, 1.0, %v898_v29  ;;  %vm254_vm3 = vcmp.lt.f32.partialorder %v985_v26, 0.3  ;;  %vm255_vm4 = vcmp.lt.f32.partialorder %v988_v28, 0.3 }
  0x3c   : > { %v675_v34 = vsel %vm240_vm2, 1.0, %v898_v29  ;;  %vm256_vm5 = vmand %vm252_vm15, %vm254_vm3  ;;  %vm269_vm6 = vcmp.ge.f32.partialorder %v985_v26, 0.3  ;;  %vm270_vm7 = vcmp.ge.f32.partialorder %v988_v28, 0.3  ;;  %vm303_vm14 = vcmp.ge.f32.partialorder %v985_v26, 0.5 }
  0x3d   : > { %v229_v35 = vrot.slane %v228_v32, 4  ;;  %v245_v36 = vadd.f32 %v675_v34, %v674_v33  ;;  %vm257_vm9 = vmand %vm253_vm0, %vm255_vm4  ;;  %v676_v37 = vsel %vm256_vm5, 1.0, %v898_v29  ;;  %vm271_vm10 = vcmp.lt.f32.partialorder %v985_v26, 0.4 }
  0x3e   : > { %v677_v38 = vsel %vm257_vm9, 1.0, %v898_v29  ;;  %vm272_vm11 = vcmp.lt.f32.partialorder %v988_v28, 0.4  ;;  %vm273_vm12 = vmand %vm269_vm6, %vm271_vm10  ;;  %vm286_vm13 = vcmp.ge.f32.partialorder %v985_v26, 0.4  ;;  %vm304_vm3 = vcmp.ge.f32.partialorder %v988_v28, 0.5 }
  0x3f   : > { %v230_v39 = vadd.f32 %v229_v35, %v228_v32  ;;  %v246_v40 = vrot.slane %v245_v36, 4  ;;  %v262_v41 = vadd.f32 %v677_v38, %v676_v37  ;;  %vm274_vm15 = vmand %vm270_vm7, %vm272_vm11  ;;  %v678_v42 = vsel %vm273_vm12, 1.0, %v898_v29 }
  0x40   : > { %v679_v43 = vsel %vm274_vm15, 1.0, %v898_v29  ;;  %vm287_vm0 = vcmp.ge.f32.partialorder %v988_v28, 0.4  ;;  %vm290_vm2 = vmand %vm286_vm13, %vm288_vm1  ;;  %vm305_vm4 = vcmp.lt.f32.partialorder %v985_v26, 0.6  ;;  %vm373_vm12 = vcmp.lt.f32.partialorder %v985_v26, 1000.0 }
  0x41   : > { %v231_v44 = vrot.slane %v230_v39, 2  ;;  %v247_v45 = vadd.f32 %v246_v40, %v245_v36  ;;  %v263_v46 = vrot.slane %v262_v41, 4  ;;  %v279_v47 = vadd.f32 %v679_v43, %v678_v42  ;;  %vm291_vm5 = vmand %vm287_vm0, %vm289_vm8 }
  0x42   : > { %v680_v48 = vsel %vm290_vm2, 1.0, %v898_v29  ;;  %v681_v49 = vsel %vm291_vm5, 1.0, %v898_v29  ;;  %vm306_vm6 = vcmp.lt.f32.partialorder %v988_v28, 0.6  ;;  %vm307_vm1 = vmand %vm303_vm14, %vm305_vm4  ;;  %vm320_vm7 = vcmp.ge.f32.partialorder %v985_v26, 0.6 }
  0x43   : > { %v232_v50 = vadd.f32 %v231_v44, %v230_v39  ;;  %v248_v51 = vrot.slane %v247_v45, 2  ;;  %v264_v52 = vadd.f32 %v263_v46, %v262_v41  ;;  %v280_v53 = vrot.slane %v279_v47, 4  ;;  %vm308_vm9 = vmand %vm304_vm3, %vm306_vm6 }
  0x44   : > { %v296_v54 = vadd.f32 %v681_v49, %v680_v48  ;;  %v682_v55 = vsel %vm307_vm1, 1.0, %v898_v29  ;;  %v683_v56 = vsel %vm308_vm9, 1.0, %v898_v29  ;;  %vm321_vm8 = vcmp.ge.f32.partialorder %v988_v28, 0.6 }
  0x45   : > { %v233_v57 = vrot.slane %v232_v50, 1  ;;  %v249_v58 = vadd.f32 %v248_v51, %v247_v45  ;;  %v265_v59 = vrot.slane %v264_v52, 2  ;;  %v281_v60 = vadd.f32 %v280_v53, %v279_v47 }
  0x46   : > { %v297_v61 = vrot.slane %v296_v54, 4  ;;  %v313_v62 = vadd.f32 %v683_v56, %v682_v55  ;;  %vm322_vm10 = vcmp.lt.f32.partialorder %v985_v26, 0.7  ;;  %vm323_vm11 = vcmp.lt.f32.partialorder %v988_v28, 0.7 }
  0x47   : > { %v234_v63 = vadd.f32 %v233_v57, %v232_v50  ;;  %v250_v0 = vrot.slane %v249_v58, 1  ;;  %v266_v1 = vadd.f32 %v265_v59, %v264_v52  ;;  %v282_v2 = vrot.slane %v281_v60, 2  ;;  %vm324_vm13 = vmand %vm320_vm7, %vm322_vm10 }
  0x48   : > { %vm374_vm14 = vcmp.lt.f32.partialorder %v988_v28, 1000.0  ;;  %v298_v3 = vadd.f32 %v297_v61, %v296_v54  ;;  %v314_v4 = vrot.slane %v313_v62, 4  ;;  %vm325_vm15 = vmand %vm321_vm8, %vm323_vm11  ;;  %v684_v5 = vsel %vm324_vm13, 1.0, %v898_v29  ;;  %v388_v61 = vld [vmem:[#allocation2] sm:$0xff] }
  0x49   : > { %vm337_vm0 = vcmp.ge.f32.partialorder %v985_v26, 0.7  ;;  %v251_v6 = vadd.f32 %v250_v0, %v249_v58  ;;  %v267_v9 = vrot.slane %v266_v1, 1  ;;  %v283_v10 = vadd.f32 %v282_v2, %v281_v60 }
  0x4a   : > { %v685_v11 = vsel %vm325_vm15, 1.0, %v898_v29  ;;  %v299_v12 = vrot.slane %v298_v3, 2  ;;  %v315_v13 = vadd.f32 %v314_v4, %v313_v62  ;;  %vm338_vm2 = vcmp.ge.f32.partialorder %v988_v28, 0.7 }
  0x4b   : > { %v330_v14 = vadd.f32 %v685_v11, %v684_v5  ;;  %v268_v15 = vadd.f32 %v267_v9, %v266_v1  ;;  %v284_v16 = vrot.slane %v283_v10, 1  ;;  %vm339_vm3 = vcmp.lt.f32.partialorder %v985_v26, 0.8  ;;  %v389_v5 = vld [vmem:[#allocation2 + $0x8] sm:$0x3] }
  0x4c   : > { %vm340_vm4 = vcmp.lt.f32.partialorder %v988_v28, 0.8  ;;  %v300_v17 = vadd.f32 %v299_v12, %v298_v3  ;;  %v316_v18 = vrot.slane %v315_v13, 2  ;;  %vm341_vm5 = vmand %vm337_vm0, %vm339_vm3  ;;  %vm354_vm6 = vcmp.ge.f32.partialorder %v985_v26, 0.8 }
  0x4d   : > { %v331_v19 = vrot.slane %v330_v14, 4  ;;  %v285_v20 = vadd.f32 %v284_v16, %v283_v10  ;;  %vm342_vm1 = vmand %vm338_vm2, %vm340_vm4  ;;  %v686_v21 = vsel %vm341_vm5, 1.0, %v898_v29  ;;  %vm355_vm7 = vcmp.ge.f32.partialorder %v988_v28, 0.8 }
  0x4e   : > { %vm356_vm9 = vcmp.lt.f32.partialorder %v985_v26, 0.9  ;;  %v301_v22 = vrot.slane %v300_v17, 1  ;;  %v317_v23 = vadd.f32 %v316_v18, %v315_v13  ;;  %v687_v25 = vsel %vm342_vm1, 1.0, %v898_v29 }
  0x4f   : > { %v332_v24 = vadd.f32 %v331_v19, %v330_v14  ;;  %vm358_vm8 = vmand %vm354_vm6, %vm356_vm9  ;;  %v347_v27 = vadd.f32 %v687_v25, %v686_v21  ;;  %vm357_vm10 = vcmp.lt.f32.partialorder %v988_v28, 0.9  ;;  %vm371_vm11 = vcmp.ge.f32.partialorder %v985_v26, 0.9 }
  0x50   : > { %v688_v30 = vsel %vm358_vm8, 1.0, %v898_v29  ;;  %v302_v31 = vadd.f32 %v301_v22, %v300_v17  ;;  %v318_v32 = vrot.slane %v317_v23, 1  ;;  %vm359_vm13 = vmand %vm355_vm7, %vm357_vm10  ;;  %vm372_vm15 = vcmp.ge.f32.partialorder %v988_v28, 0.9 }
  0x51   : > { %v333_v33 = vrot.slane %v332_v24, 2  ;;  %v348_v34 = vrot.slane %v347_v27, 4  ;;  %v689_v35 = vsel %vm359_vm13, 1.0, %v898_v29  ;;  %vm375_vm0 = vmand %vm371_vm11, %vm373_vm12  ;;  %vm390_vm2 = vcmask 1040384  }
  0x52   : > { %vm392_vm3 = vcmask 1041408   ;;  %v319_v36 = vadd.f32 %v318_v32, %v317_v23  ;;  %v364_v38 = vadd.f32 %v689_v35, %v688_v30  ;;  %vm376_vm4 = vmand %vm372_vm15, %vm374_vm14  ;;  %v690_v39 = vsel %vm375_vm0, 1.0, %v898_v29 }
  0x53   : > { %v334_v37 = vadd.f32 %v333_v33, %v332_v24  ;;  %v349_v40 = vadd.f32 %v348_v34, %v347_v27  ;;  %v691_v41 = vsel %vm376_vm4, 1.0, %v898_v29  ;;  %v391_v42 = vsel %vm390_vm2, %v234_v63, %v251_v6 }
  0x54   : > { %vm394_vm5 = vcmask 1042432   ;;  %v365_v44 = vrot.slane %v364_v38, 4  ;;  %v381_v45 = vadd.f32 %v691_v41, %v690_v39  ;;  %v393_v46 = vsel %vm392_vm3, %v391_v42, %v268_v15 }
  0x55   : > { %v335_v43 = vrot.slane %v334_v37, 1  ;;  %v350_v47 = vrot.slane %v349_v40, 2  ;;  %v395_v48 = vsel %vm394_vm5, %v393_v46, %v285_v20  ;;  %vm396_vm12 = vcmask 1043456  }
  0x56   : > { %vm398_vm6 = vcmask 1044480   ;;  %v366_v50 = vadd.f32 %v365_v44, %v364_v38  ;;  %v382_v51 = vrot.slane %v381_v45, 4  ;;  %v397_v52 = vsel %vm396_vm12, %v395_v48, %v302_v31 }
  0x57   : > { %v336_v49 = vadd.f32 %v335_v43, %v334_v37  ;;  %v351_v53 = vadd.f32 %v350_v47, %v349_v40  ;;  %v399_v54 = vsel %vm398_vm6, %v397_v52, %v319_v36  ;;  %vm400_vm14 = vcmask 1045504  }
  0x58   : > { %v367_v55 = vrot.slane %v366_v50, 2  ;;  %v383_v29 = vadd.f32 %v382_v51, %v381_v45  ;;  %vm402_vm1 = vcmask 1046528  }
  0x59   : > { %v352_v56 = vrot.slane %v351_v53, 1  ;;  %v401_v59 = vsel %vm400_vm14, %v399_v54, %v336_v49 }
  0x5a   : > { %v368_v57 = vadd.f32 %v367_v55, %v366_v50  ;;  %v384_v58 = vrot.slane %v383_v29, 2 }
  0x5b   : > { %v353_v60 = vadd.f32 %v352_v56, %v351_v53 }
  0x5c   : > { %v369_v62 = vrot.slane %v368_v57, 1  ;;  %v385_v63 = vadd.f32 %v384_v58, %v383_v29 }
  0x5d   : > { %v403_v0 = vsel %vm402_vm1, %v401_v59, %v353_v60 }
  0x5e   : > { %v370_v1 = vadd.f32 %v369_v62, %v368_v57  ;;  %v386_v2 = vrot.slane %v385_v63, 1  ;;  %v405_v3 = vadd.f32 %v403_v0, %v388_v61 }
  0x60   : > { %v387_v4 = vadd.f32 %v386_v2, %v385_v63  ;;  %407 = vst [vmem:[#allocation2] sm:$0xff] %v405_v3 }
  0x62   : > { %v404_v6 = vsel %vm390_vm2, %v370_v1, %v387_v4 }
  0x63   : > { %v406_v9 = vadd.f32 %v404_v6, %v389_v5 }
  0x65   : > { %408 = vst [vmem:[#allocation2 + $0x8] sm:$0x3] %v406_v9 }
  0x66 PF: > { %p409_p9 = scmp.eq.s32.totalorder %s883_s9, 1 }
  0x67   : > { %vm418_vm7 = vcmask (%p409_p9), 1041408   ;;  %v414_v12 = vld [vmem:[#allocation2] sm:$0xff] (%p409_p9)  ;;  %v899_v15 = vmov (%p409_p9), 0.0  }
  0x68   : > { %413 = sbr.rel (!%p409_p9) target bundleno = 273 (0x111), region = 48 }
  0x6c   : > { %v415_v10 = vld [vmem:[#allocation2 + $0x8] sm:$0x3] (%p409_p9) }
  0x6d   : > { %v419_v11 = vsel %vm418_vm7, %v415_v10, 0.0 }
  0x6e   : > { %420 = vadd.xlane.f32.xlu0 %v419_v11 }
  0x76   : > { %416 = vadd.xlane.f32.xlu0 %v414_v12 }
  0xe1   : > { %v1074_v13 = vpop.xlane.xlu0 %420 }
  0xe2   : > { %vm423_vm9 = vcmp.gt.f32.partialorder %v1074_v13, 0.0  ;;  %v437_v14 = vmax.f32 %v1074_v13, 1.0 }
  0xe3   : > { %v694_v16 = vsel %vm423_vm9, 1.0, %v899_v15 }
  0xe4   : > { %763 = vrcp.f32 %v437_v14  ;;  %v428_v19 = vsel %vm418_vm7, %v694_v16, 0.0  ;;  %vm458_vm13 = vweird.f32 %v437_v14  ;;  %v464_v42 = vand.u32 2147483648, %v437_v14 }
  0xe5   : > { %v462_v44 = vand.u32 2147483647, %v437_v14 }
  0xe6   : > { %v465_v49 = vor.u32 1.1754944e-38, %v464_v42 }
  0xe7   : > { %vm463_vm3 = vcmp.eq.f32.partialorder %v462_v44, 8.507059e+37 }
  0xe9   : > { %v417_v17 = vpop.xlane.xlu0 %416 }
  0xea   : > { %vm422_vm8 = vcmp.gt.f32.partialorder %v417_v17, 0.0  ;;  %v436_v18 = vmax.f32 %v417_v17, 1.0  ;;  %v764_v23 = vpop.eup %763 }
  0xeb   : > { %v693_v20 = vsel %vm422_vm8, 1.0, %v899_v15  ;;  %v454_v27 = vmul.f32 %v764_v23, %v437_v14  ;;  %vm459_vm10 = vweird.f32 %v764_v23 }
  0xec   : > { %v429_v21 = vadd.f32 %v693_v20, %v428_v19  ;;  %765 = vrcp.f32 %v436_v18  ;;  %v449_v43 = vand.u32 2147483648, %v436_v18  ;;  %vm460_vm15 = vmor %vm458_vm13, %vm459_vm10  ;;  %vm443_vm0 = vweird.f32 %v436_v18 }
  0xed   : > { %v455_v33 = vsub.f32 1.0, %v454_v27  ;;  %v447_v45 = vand.u32 2147483647, %v436_v18 }
  0xee   : > { %v430_v22 = vrot.slane %v429_v21, 4  ;;  %v450_v50 = vor.u32 1.1754944e-38, %v449_v43 }
  0xef   : > { %v456_v37 = vmul.f32 %v764_v23, %v455_v33  ;;  %vm448_vm4 = vcmp.eq.f32.partialorder %v447_v45, 8.507059e+37 }
  0xf0   : > { %v431_v24 = vadd.f32 %v430_v22, %v429_v21 }
  0xf1   : > { %v457_v40 = vadd.f32 %v764_v23, %v456_v37 }
  0xf2   : > { %v766_v25 = vpop.eup %765  ;;  %v432_v30 = vrot.slane %v431_v24, 2 }
  0xf3   : > { %v439_v31 = vmul.f32 %v766_v25, %v436_v18  ;;  %vm444_vm11 = vweird.f32 %v766_v25  ;;  %v461_v47 = vsel %vm460_vm15, %v764_v23, %v457_v40 }
  0xf4   : > { %v433_v32 = vadd.f32 %v432_v30, %v431_v24  ;;  %vm445_vm2 = vmor %vm443_vm0, %vm444_vm11  ;;  %v466_v52 = vsel %vm463_vm3, %v465_v49, %v461_v47 }
  0xf5   : > { %v440_v35 = vsub.f32 1.0, %v439_v31  ;;  %v467_v57 = vmul.f32 2.0, %v466_v52 }
  0xf6   : > { %v434_v34 = vrot.slane %v433_v32, 1 }
  0xf7   : > { %v441_v38 = vmul.f32 %v766_v25, %v440_v35  ;;  %v469_v62 = vsel %vm423_vm9, %v467_v57, 0.0 }
  0xf8   : > { %v435_v36 = vadd.f32 %v434_v34, %v433_v32 }
  0xf9   : > { %v442_v41 = vadd.f32 %v766_v25, %v441_v38 }
  0xfa   : > { %v470_v39 = vmax.f32 %v435_v36, 1.0 }
  0xfb   : > { %v446_v48 = vsel %vm445_vm2, %v766_v25, %v442_v41 }
  0xfc   : > { %767 = vrcp.f32 %v470_v39  ;;  %v451_v53 = vsel %vm448_vm4, %v450_v50, %v446_v48  ;;  %v482_v55 = vand.u32 2147483648, %v470_v39  ;;  %v480_v56 = vand.u32 2147483647, %v470_v39 }
  0xfd   : > { %v452_v58 = vmul.f32 2.0, %v451_v53  ;;  %vm476_vm12 = vweird.f32 %v470_v39 }
  0xfe   : > { %v483_v60 = vor.u32 1.1754944e-38, %v482_v55  ;;  %vm481_vm14 = vcmp.eq.f32.partialorder %v480_v56, 8.507059e+37 }
  0xff   : > { %v468_v63 = vsel %vm422_vm8, %v452_v58, 0.0 }
 0x102   : > { %v768_v46 = vpop.eup %767 }
 0x103   : > { %v472_v51 = vmul.f32 %v768_v46, %v470_v39  ;;  %vm477_vm5 = vweird.f32 %v768_v46 }
 0x104   : > { %vm478_vm6 = vmor %vm476_vm12, %vm477_vm5 }
 0x105   : > { %v473_v54 = vsub.f32 1.0, %v472_v51 }
 0x107   : > { %v474_v29 = vmul.f32 %v768_v46, %v473_v54 }
 0x109   : > { %v475_v59 = vadd.f32 %v768_v46, %v474_v29 }
 0x10b   : > { %v479_v61 = vsel %vm478_vm6, %v768_v46, %v475_v59 }
 0x10c   : > { %v484_v0 = vsel %vm481_vm14, %v483_v60, %v479_v61 }
 0x10d   : > { %v485_v1 = vmul.f32 %v484_v0, %v468_v63  ;;  %v486_v2 = vmul.f32 %v484_v0, %v469_v62 }
 0x10f   : > { %487 = vst [vmem:[#allocation3 + $0x8] sm:$0xff] %v485_v1 }
 0x110   : > { %488 = vst [vmem:[#allocation3] sm:$0x3] %v486_v2 }
 0x111 PF: > { %p695_p10 = scmp.ne.s32.totalorder %s883_s9, 1 }
 0x113   : > { %491 = sbr.rel (%p695_p10) target bundleno = 311 (0x137), region = 52 }
 0x118   : > { %v1085_v3 = vld [vmem:[#allocation3 + $0x8] sm:$0xff]  ;;  %vm494_vm1 = vcmp.ge.f32.partialorder %v985_v26, 0.0  ;;  %vm495_vm7 = vcmp.ge.f32.partialorder %v988_v28, 0.0  ;;  %vm496_vm10 = vcmp.lt.f32.partialorder %v985_v26, 0.1  ;;  %v588_v44 = vld [vmem:[#allocation9] sm:$0xff] }
 0x119   : > { %vm497_vm9 = vcmp.lt.f32.partialorder %v988_v28, 0.1  ;;  %v500_v4 = vperm.slane %v1085_v3, 0  ;;  %v509_v5 = vperm.slane %v1085_v3, 1  ;;  %vm498_vm8 = vmand %vm494_vm1, %vm496_vm10  ;;  %vm503_vm11 = vcmp.ge.f32.partialorder %v985_v26, 0.1 }
 0x11a   : > { %vm504_vm13 = vcmp.ge.f32.partialorder %v988_v28, 0.1  ;;  %vm505_vm15 = vcmp.lt.f32.partialorder %v985_v26, 0.2  ;;  %vm499_vm0 = vmand %vm495_vm7, %vm497_vm9  ;;  %vm506_vm2 = vcmp.lt.f32.partialorder %v988_v28, 0.2 }
 0x11b   : > { %v501_v6 = vsel %vm498_vm8, %v500_v4, 0.0  ;;  %vm512_vm3 = vcmp.ge.f32.partialorder %v985_v26, 0.2  ;;  %v518_v9 = vperm.slane %v1085_v3, 2  ;;  %v502_v10 = vsel %vm499_vm0, %v500_v4, 0.0  ;;  %vm507_vm4 = vmand %vm503_vm11, %vm505_vm15 }
 0x11c   : > { %vm513_vm5 = vcmp.ge.f32.partialorder %v988_v28, 0.2  ;;  %vm514_vm12 = vcmp.lt.f32.partialorder %v985_v26, 0.3  ;;  %vm508_vm6 = vmand %vm504_vm13, %vm506_vm2  ;;  %v510_v11 = vsel %vm507_vm4, %v509_v5, %v501_v6  ;;  %vm515_vm14 = vcmp.lt.f32.partialorder %v988_v28, 0.3 }
 0x11d   : > { %vm521_vm1 = vcmp.ge.f32.partialorder %v985_v26, 0.3  ;;  %v527_v12 = vperm.slane %v1085_v3, 3  ;;  %v511_v13 = vsel %vm508_vm6, %v509_v5, %v502_v10  ;;  %vm516_vm7 = vmand %vm512_vm3, %vm514_vm12  ;;  %vm522_vm10 = vcmp.ge.f32.partialorder %v988_v28, 0.3 }
 0x11e   : > { %vm523_vm9 = vcmp.lt.f32.partialorder %v985_v26, 0.4  ;;  %vm524_vm8 = vcmp.lt.f32.partialorder %v988_v28, 0.4  ;;  %vm517_vm11 = vmand %vm513_vm5, %vm515_vm14  ;;  %v519_v14 = vsel %vm516_vm7, %v518_v9, %v510_v11  ;;  %vm530_vm15 = vcmp.ge.f32.partialorder %v985_v26, 0.4 }
 0x11f   : > { %vm532_vm13 = vcmp.lt.f32.partialorder %v985_v26, 0.5  ;;  %v536_v15 = vperm.slane %v1085_v3, 4  ;;  %v520_v16 = vsel %vm517_vm11, %v518_v9, %v511_v13  ;;  %vm525_vm0 = vmand %vm521_vm1, %vm523_vm9  ;;  %vm531_vm2 = vcmp.ge.f32.partialorder %v988_v28, 0.4  ;;  %v493_v22 = vld [vmem:[#allocation3] sm:$0x3] }
 0x120   : > { %vm533_vm3 = vcmp.lt.f32.partialorder %v988_v28, 0.5  ;;  %vm526_vm4 = vmand %vm522_vm10, %vm524_vm8  ;;  %v528_v17 = vsel %vm525_vm0, %v527_v12, %v519_v14  ;;  %vm539_vm12 = vcmp.ge.f32.partialorder %v985_v26, 0.5  ;;  %vm541_vm6 = vcmp.lt.f32.partialorder %v985_v26, 0.6 }
 0x121   : > { %v545_v18 = vperm.slane %v1085_v3, 5  ;;  %v529_v19 = vsel %vm526_vm4, %v527_v12, %v520_v16  ;;  %vm534_vm5 = vmand %vm530_vm15, %vm532_vm13  ;;  %vm540_vm14 = vcmp.ge.f32.partialorder %v988_v28, 0.5  ;;  %vm542_vm7 = vcmp.lt.f32.partialorder %v988_v28, 0.6 }
 0x122   : > { %vm535_vm11 = vmand %vm531_vm2, %vm533_vm3  ;;  %v537_v20 = vsel %vm534_vm5, %v536_v15, %v528_v17  ;;  %vm548_vm1 = vcmp.ge.f32.partialorder %v985_v26, 0.6  ;;  %vm550_vm9 = vcmp.lt.f32.partialorder %v985_v26, 0.7  ;;  %v554_v21 = vperm.slane %v1085_v3, 6 }
 0x123   : > { %v538_v23 = vsel %vm535_vm11, %v536_v15, %v529_v19  ;;  %vm543_vm10 = vmand %vm539_vm12, %vm541_vm6  ;;  %vm549_vm8 = vcmp.ge.f32.partialorder %v988_v28, 0.6  ;;  %vm551_vm0 = vcmp.lt.f32.partialorder %v988_v28, 0.7  ;;  %vm557_vm13 = vcmp.ge.f32.partialorder %v985_v26, 0.7 }
 0x124   : > { %vm544_vm15 = vmand %vm540_vm14, %vm542_vm7  ;;  %v546_v24 = vsel %vm543_vm10, %v545_v18, %v537_v20  ;;  %vm559_vm2 = vcmp.lt.f32.partialorder %v985_v26, 0.8  ;;  %v563_v25 = vperm.slane %v1085_v3, 7  ;;  %vm558_vm4 = vcmp.ge.f32.partialorder %v988_v28, 0.7 }
 0x125   : > { %v547_v27 = vsel %vm544_vm15, %v545_v18, %v538_v23  ;;  %vm552_vm3 = vmand %vm548_vm1, %vm550_vm9  ;;  %vm560_vm5 = vcmp.lt.f32.partialorder %v988_v28, 0.8  ;;  %vm566_vm12 = vcmp.ge.f32.partialorder %v985_v26, 0.8  ;;  %vm568_vm6 = vcmp.lt.f32.partialorder %v985_v26, 0.9 }
 0x126   : > { %vm553_vm11 = vmand %vm549_vm8, %vm551_vm0  ;;  %v555_v30 = vsel %vm552_vm3, %v554_v21, %v546_v24  ;;  %v572_v31 = vperm.slane %v493_v22, 0  ;;  %vm567_vm7 = vcmp.ge.f32.partialorder %v988_v28, 0.8  ;;  %vm569_vm10 = vcmp.lt.f32.partialorder %v988_v28, 0.9 }
 0x127   : > { %v556_v32 = vsel %vm553_vm11, %v554_v21, %v547_v27  ;;  %vm561_vm14 = vmand %vm557_vm13, %vm559_vm2  ;;  %vm575_vm1 = vcmp.ge.f32.partialorder %v985_v26, 0.9  ;;  %vm577_vm9 = vcmp.lt.f32.partialorder %v985_v26, 1000.0  ;;  %v581_v34 = vperm.slane %v493_v22, 1 }
 0x128   : > { %vm562_vm15 = vmand %vm558_vm4, %vm560_vm5  ;;  %v564_v33 = vsel %vm561_vm14, %v563_v25, %v555_v30  ;;  %vm576_vm0 = vcmp.ge.f32.partialorder %v988_v28, 0.9  ;;  %vm578_vm3 = vcmp.lt.f32.partialorder %v988_v28, 1000.0 }
 0x129   : > { %v565_v35 = vsel %vm562_vm15, %v563_v25, %v556_v32  ;;  %vm570_vm8 = vmand %vm566_vm12, %vm568_vm6 }
 0x12a   : > { %vm571_vm11 = vmand %vm567_vm7, %vm569_vm10  ;;  %v573_v36 = vsel %vm570_vm8, %v572_v31, %v564_v33 }
 0x12b   : > { %v574_v37 = vsel %vm571_vm11, %v572_v31, %v565_v35  ;;  %vm579_vm13 = vmand %vm575_vm1, %vm577_vm9 }
 0x12c   : > { %vm580_vm2 = vmand %vm576_vm0, %vm578_vm3  ;;  %v582_v38 = vsel %vm579_vm13, %v581_v34, %v573_v36 }
 0x12d   : > { %v583_v39 = vsel %vm580_vm2, %v581_v34, %v574_v37  ;;  %v584_v40 = vmul.f32 %v582_v38, %v968_v7 }
 0x12e   : > { %v585_v41 = vmul.f32 %v583_v39, %v970_v8 }
 0x12f   : > { %v586_v42 = vmul.f32 %v584_v40, %v985_v26 }
 0x130   : > { %v587_v43 = vmul.f32 %v585_v41, %v988_v28 }
 0x132   : > { %v589_v45 = vadd.f32 %v587_v43, %v586_v42 }
 0x134   : > { %v590_v46 = vadd.f32 %v589_v45, %v588_v44 }
 0x136   : > { %591 = vst [vmem:[#allocation9] sm:$0xff] %v590_v46 }
 0x137 PF: > { %p725_p11 = scmp.eq.s32.totalorder %s663_s12, 1  ;;  %s600_s30 = sshll.u32 %s1155_s2, 4  ;;  %s601_s30 = int_to_ptr.hbm [resolvable:$true] %s600_s30 }
 0x138   : > { %s900_s3 = smov [#allocation9]  }
 0x139   : > { %s598_s4 = sshll.u32 %s900_s3, 4  ;;  %s599_s4 = int_to_ptr.vmem [resolvable:$true] %s598_s4 }
 0x13a   : > { %711 = dma.vmem_to_hbm [thread:$0]  (%p725_p11), %s599_s4, 128, %s601_s30, [#allocation6]  }
 0x13b   : > { %878 = dma.done.wait (%p725_p11), [#allocation6], 128  }
 0x13c   : > { %880 = vsyncadd (%p725_p11), [#allocation6], 4294967168 }
 0x13d PF: > { %s15_s11 = sadd.s32 1, %s891_s11   ;;  %s1158_s9 = smov %s887_s10 }
 0x13e   : > { %p12_p12 = scmp.ge.s32.totalorder %s15_s11, 4   ;;  %s1159_s10 = smov %s1161_s13 }
 0x140   :  { %14 = sbr.rel (!%p12_p12) target bundleno = 4 (0x4), region = 79 }
 0x145   :  { %614 = vsyncpa [#allocation5], 1 }
 0x146   :  { %616 = vsyncpa [#allocation5 + $0x1], 1 }
 0x147   :  { %617 = vsyncpa [#allocation8], 1 }
 0x148   :  { %618 = vsyncpa [#allocation6], 1 }
 0x149   :  { %620 = vsyncpa [#allocation6 + $0x1], 1 }

</bundles_post_ra>
